<compile_context>
chip_gen: v7x
topology: tpu7x:2x2x1
jax: 0.10.0
libtpu: 0.0.40
codegen_flags: <defaults>
</compile_context>

<pallas_src>
import math

import jax
import jax.numpy as jnp
from jax import lax
from jax.experimental import pallas as pl
from jax.experimental.pallas import tpu as pltpu


def _linear_lora_kernel(x_ref, w_ref, b_ref, a_ref, bb_ref, o_ref, acc_ref, xa_ref):
    """One (i, j) output tile; the K reduction runs along grid axis 2.

    x_ref  : (tm, tk)   activation tile
    w_ref  : (tn, tk)   linear weight tile in (out, in) layout
    b_ref  : (1, tn)    bias tile
    a_ref  : (tk, r)    LoRA A tile
    bb_ref : (r, tn)    LoRA B tile (alpha pre-folded)
    o_ref  : (tm, tn)   output tile
    acc_ref: (tm, tn)   f32 VMEM accumulator (base path)
    xa_ref : (tm, r)    f32 VMEM accumulator for x @ A
    """
    k = pl.program_id(2)

    @pl.when(k == 0)
    def _():
        acc_ref[...] = jnp.zeros_like(acc_ref)
        xa_ref[...] = jnp.zeros_like(xa_ref)

    x = x_ref[...]
    # Base path: (tm, tk) . (tn, tk), contracting the last dims -> (tm, tn).
    acc_ref[...] += lax.dot_general(
        x, w_ref[...],
        dimension_numbers=(((1,), (1,)), ((), ())),
        preferred_element_type=jnp.float32)
    # LoRA partial product: accumulate x @ A (tiny rank-wide output) over K.
    xa_ref[...] += jnp.dot(x, a_ref[...], preferred_element_type=jnp.float32)

    # Epilogue once per (i, j) tile: rank-K LoRA matmul + bias + single store.
    @pl.when(k == pl.num_programs(2) - 1)
    def _():
        lora = jnp.dot(xa_ref[...], bb_ref[...], preferred_element_type=jnp.float32)
        o_ref[...] = (acc_ref[...] + b_ref[...] + lora).astype(o_ref.dtype)


def _round_up(v, m):
    return (v + m - 1) // m * m


def linear_with_lora(x, w, b, a, bmat, alpha, *,
                     tm=256, tn=256, tk=512, param_dtype=None):
    """out = x @ w.T + b + alpha * ((x @ a) @ bmat)

    x:(M,K) w:(N,K) b:(N,) a:(K,r) bmat:(r,N) -> (M,N)
    param_dtype: optionally stream w / a / (alpha*B) in e.g. bfloat16 (f32 accumulation kept).
    """
    m, k_dim = x.shape
    n_dim, _ = w.shape
    rank = a.shape[1]

    # Fold alpha into the tiny LoRA B matrix once -> no scalar operand in the kernel.
    bb = bmat * jnp.asarray(alpha, bmat.dtype)

    if param_dtype is not None:
        w = w.astype(param_dtype)
        a = a.astype(param_dtype)
        bb = bb.astype(param_dtype)

    # Adapt tile sizes to the (padded) problem: lane dims multiples of 128,
    # sublane dims multiples of 8.  Defaults (256/256/512) target the v6e/v7x MXU
    # while staying tiny relative to even v7x's 64 MiB VMEM.
    tm = min(tm, _round_up(m, 8))
    tn = min(tn, _round_up(n_dim, 128))
    tk = min(tk, _round_up(k_dim, 128))
    r_pad = _round_up(rank, 128)          # lane-dense LoRA rank dimension

    m_pad = _round_up(m, tm)
    n_pad = _round_up(n_dim, tn)
    k_pad = _round_up(k_dim, tk)

    xp = jnp.pad(x, ((0, m_pad - m), (0, k_pad - k_dim)))
    wp = jnp.pad(w, ((0, n_pad - n_dim), (0, k_pad - k_dim)))       # stays (out, in)
    bp = jnp.pad(b, (0, n_pad - n_dim)).reshape(1, n_pad)
    ap = jnp.pad(a, ((0, k_pad - k_dim), (0, r_pad - rank)))
    bbp = jnp.pad(bb, ((0, r_pad - rank), (0, n_pad - n_dim)))

    grid = (m_pad // tm, n_pad // tn, k_pad // tk)

    def bytes_of(shape, dt):
        return math.prod(shape) * jnp.dtype(dt).itemsize

    wdt = wp.dtype
    vmem_bytes = 2 * (bytes_of((tm, tk), xp.dtype) + bytes_of((tn, tk), wdt)
                      + bytes_of((1, tn), bp.dtype) + bytes_of((tk, r_pad), wdt)
                      + bytes_of((r_pad, tn), wdt) + bytes_of((tm, tn), x.dtype))
    vmem_bytes += bytes_of((tm, tn), jnp.float32) + bytes_of((tm, r_pad), jnp.float32)
    vmem_bytes = int(min(vmem_bytes + (4 << 20), 64 << 20))

    out = pl.pallas_call(
        _linear_lora_kernel,
        out_shape=jax.ShapeDtypeStruct((m_pad, n_pad), x.dtype),
        grid_spec=pltpu.PrefetchScalarGridSpec(
            num_scalar_prefetch=0,
            grid=grid,
            in_specs=[
                pl.BlockSpec((tm, tk), lambda i, j, k: (i, k)),       # x
                pl.BlockSpec((tn, tk), lambda i, j, k: (j, k)),       # W (out, in)
                pl.BlockSpec((1, tn), lambda i, j, k: (0, j)),        # bias
                pl.BlockSpec((tk, r_pad), lambda i, j, k: (k, 0)),    # LoRA A
                pl.BlockSpec((r_pad, tn), lambda i, j, k: (0, j)),    # LoRA B (alpha folded)
            ],
            out_specs=pl.BlockSpec((tm, tn), lambda i, j, k: (i, j)),
            scratch_shapes=[
                pltpu.VMEM((tm, tn), jnp.float32),    # base accumulator
                pltpu.VMEM((tm, r_pad), jnp.float32), # x @ A accumulator
            ],
        ),
        compiler_params=pltpu.CompilerParams(
            dimension_semantics=("parallel", "parallel", "arbitrary"),
            vmem_limit_bytes=vmem_bytes,
        ),
    )(xp, wp, bp, ap, bbp)

    return out[:m, :n_dim]


def _init_params(key, in_dim, out_dim, rank):
    """Deterministic parameter init mirroring the PyTorch module's __init__."""
    k_w, k_b, k_a = jax.random.split(key, 3)

    # nn.Linear default: kaiming_uniform(a=sqrt(5)) -> bound = 1/sqrt(fan_in)
    w_bound = 1.0 / math.sqrt(in_dim)
    w = jax.random.uniform(k_w, (out_dim, in_dim), jnp.float32, -w_bound, w_bound)
    b = jax.random.uniform(k_b, (out_dim,), jnp.float32, -w_bound, w_bound)

    # LoRA A: kaiming_uniform(a=sqrt(5)) on (in_dim, rank); torch fan_in = size(1) = rank
    gain = math.sqrt(2.0 / (1.0 + 5.0))
    a_bound = gain * math.sqrt(3.0 / rank)
    a = jax.random.uniform(k_a, (in_dim, rank), jnp.float32, -a_bound, a_bound)

    # LoRA B: zeros (faithful to module init; LoRA path contributes 0 at init)
    bmat = jnp.zeros((rank, out_dim), jnp.float32)
    return w, b, a, bmat


if __name__ == "__main__":
    batch, in_dim, out_dim, rank = 8, 32, 32, 4
    alpha = 4.0

    key = jax.random.PRNGKey(0)
    k_x, k_p, k_b2 = jax.random.split(key, 3)
    x = jax.random.normal(k_x, (batch, in_dim), jnp.float32)
    w, b, a, bmat = _init_params(k_p, in_dim, out_dim, rank)

    # Faithful-to-init check (B = zeros, LoRA path contributes 0).
    out = jax.block_until_ready(linear_with_lora(x, w, b, a, bmat, alpha))
    ref = x @ w.T + b + alpha * ((x @ a) @ bmat)
    assert out.shape == (batch, out_dim)
    assert jnp.allclose(out, ref, atol=1e-5, rtol=1e-5)

    # Exercise the LoRA path with a non-zero B (post-training state).
    bmat2 = jax.random.normal(k_b2, (rank, out_dim), jnp.float32) * 0.1
    out2 = jax.block_until_ready(linear_with_lora(x, w, b, a, bmat2, alpha))
    ref2 = x @ w.T + b + alpha * ((x @ a) @ bmat2)
    assert jnp.allclose(out2, ref2, atol=1e-5, rtol=1e-5)

    print("KERNEL_OK")
</pallas_src>

<mosaic_0001>
module attributes {stable_mosaic.version = 11 : i64} {
  func.func @_linear_lora_kernel(%arg0: i32, %arg1: i32, %arg2: i32, %arg3: memref<8x128xf32, #tpu.memory_space<vmem>>, %arg4: memref<128x128xf32, #tpu.memory_space<vmem>>, %arg5: memref<1x128xf32, #tpu.memory_space<vmem>>, %arg6: memref<128x128xf32, #tpu.memory_space<vmem>>, %arg7: memref<128x128xf32, #tpu.memory_space<vmem>>, %arg8: memref<8x128xf32, #tpu.memory_space<vmem>>, %arg9: memref<8x128xf32, #tpu.memory_space<vmem>>, %arg10: memref<8x128xf32, #tpu.memory_space<vmem>>) attributes {dimension_semantics = [#tpu.dimension_semantics<parallel>, #tpu.dimension_semantics<parallel>, #tpu.dimension_semantics<arbitrary>], iteration_bounds = array<i64: 1, 1, 1>, scalar_prefetch = 0 : i64, scratch_operands = 2 : i64, tpu.core_type = #tpu.core_type<tc>, window_params = [{transform_indices = @transform_0, window_bounds = array<i64: 8, 128>}, {transform_indices = @transform_1, window_bounds = array<i64: 128, 128>}, {transform_indices = @transform_2, window_bounds = array<i64: 1, 128>}, {transform_indices = @transform_3, window_bounds = array<i64: 128, 128>}, {transform_indices = @transform_4, window_bounds = array<i64: 128, 128>}, {transform_indices = @transform_5, window_bounds = array<i64: 8, 128>}]} {
    %c0_i32 = arith.constant 0 : i32
    %0 = arith.cmpi eq, %arg2, %c0_i32 : i32
    %1 = arith.extui %0 : i1 to i32
    %c0_i32_0 = arith.constant 0 : i32
    %2 = arith.cmpi ne, %1, %c0_i32_0 : i32
    scf.if %2 {
      %cst_17 = arith.constant 0.000000e+00 : f32
      %17 = vector.broadcast %cst_17 : f32 to vector<8x128xf32>
      %c0_18 = arith.constant 0 : index
      %c0_19 = arith.constant 0 : index
      %18 = vector.load %arg9[%c0_18, %c0_19] : memref<8x128xf32, #tpu.memory_space<vmem>>, vector<8x128xf32>
      tpu.vector_store %arg9[%c0_18, %c0_19], %17 {strides = array<i32>} : memref<8x128xf32, #tpu.memory_space<vmem>>, vector<8x128xf32>,
      %cst_20 = arith.constant 0.000000e+00 : f32
      %19 = vector.broadcast %cst_20 : f32 to vector<8x128xf32>
      %c0_21 = arith.constant 0 : index
      %c0_22 = arith.constant 0 : index
      %20 = vector.load %arg10[%c0_21, %c0_22] : memref<8x128xf32, #tpu.memory_space<vmem>>, vector<8x128xf32>
      tpu.vector_store %arg10[%c0_21, %c0_22], %19 {strides = array<i32>} : memref<8x128xf32, #tpu.memory_space<vmem>>, vector<8x128xf32>,
    } else {
    }
    %c0 = arith.constant 0 : index
    %c0_1 = arith.constant 0 : index
    %3 = vector.load %arg3[%c0, %c0_1] : memref<8x128xf32, #tpu.memory_space<vmem>>, vector<8x128xf32>
    %c0_2 = arith.constant 0 : index
    %c0_3 = arith.constant 0 : index
    %4 = vector.load %arg9[%c0_2, %c0_3] : memref<8x128xf32, #tpu.memory_space<vmem>>, vector<8x128xf32>
    %c0_4 = arith.constant 0 : index
    %c0_5 = arith.constant 0 : index
    %5 = vector.load %arg4[%c0_4, %c0_5] : memref<128x128xf32, #tpu.memory_space<vmem>>, vector<128x128xf32>
    %cst = arith.constant dense<0.000000e+00> : vector<8x128xf32>
    %6 = tpu.matmul %3, %5, %cst {dimension_numbers = #tpu.dot_dimension_numbers<[1], [1], [0], [0], [0, 0, 1, 0], [], []>} : vector<8x128xf32>, vector<128x128xf32>, vector<8x128xf32> -> vector<8x128xf32>
    %7 = arith.addf %4, %6 : vector<8x128xf32>
    %c0_6 = arith.constant 0 : index
    %c0_7 = arith.constant 0 : index
    %8 = vector.load %arg9[%c0_6, %c0_7] : memref<8x128xf32, #tpu.memory_space<vmem>>, vector<8x128xf32>
    tpu.vector_store %arg9[%c0_6, %c0_7], %7 {strides = array<i32>} : memref<8x128xf32, #tpu.memory_space<vmem>>, vector<8x128xf32>,
    %c0_8 = arith.constant 0 : index
    %c0_9 = arith.constant 0 : index
    %9 = vector.load %arg10[%c0_8, %c0_9] : memref<8x128xf32, #tpu.memory_space<vmem>>, vector<8x128xf32>
    %c0_10 = arith.constant 0 : index
    %c0_11 = arith.constant 0 : index
    %10 = vector.load %arg6[%c0_10, %c0_11] : memref<128x128xf32, #tpu.memory_space<vmem>>, vector<128x128xf32>
    %cst_12 = arith.constant dense<0.000000e+00> : vector<8x128xf32>
    %11 = tpu.matmul %3, %10, %cst_12 {dimension_numbers = #tpu.dot_dimension_numbers<[1], [0], [0], [1], [0, 0, 1, 1], [], []>} : vector<8x128xf32>, vector<128x128xf32>, vector<8x128xf32> -> vector<8x128xf32>
    %12 = arith.addf %9, %11 : vector<8x128xf32>
    %c0_13 = arith.constant 0 : index
    %c0_14 = arith.constant 0 : index
    %13 = vector.load %arg10[%c0_13, %c0_14] : memref<8x128xf32, #tpu.memory_space<vmem>>, vector<8x128xf32>
    tpu.vector_store %arg10[%c0_13, %c0_14], %12 {strides = array<i32>} : memref<8x128xf32, #tpu.memory_space<vmem>>, vector<8x128xf32>,
    %c0_i32_15 = arith.constant 0 : i32
    %14 = arith.cmpi eq, %arg2, %c0_i32_15 : i32
    %15 = arith.extui %14 : i1 to i32
    %c0_i32_16 = arith.constant 0 : i32
    %16 = arith.cmpi ne, %15, %c0_i32_16 : i32
    scf.if %16 {
      %c0_17 = arith.constant 0 : index
      %c0_18 = arith.constant 0 : index
      %17 = vector.load %arg10[%c0_17, %c0_18] : memref<8x128xf32, #tpu.memory_space<vmem>>, vector<8x128xf32>
      %c0_19 = arith.constant 0 : index
      %c0_20 = arith.constant 0 : index
      %18 = vector.load %arg7[%c0_19, %c0_20] : memref<128x128xf32, #tpu.memory_space<vmem>>, vector<128x128xf32>
      %cst_21 = arith.constant dense<0.000000e+00> : vector<8x128xf32>
      %19 = tpu.matmul %17, %18, %cst_21 {dimension_numbers = #tpu.dot_dimension_numbers<[1], [0], [0], [1], [0, 0, 1, 1], [], []>} : vector<8x128xf32>, vector<128x128xf32>, vector<8x128xf32> -> vector<8x128xf32>
      %c0_22 = arith.constant 0 : index
      %c0_23 = arith.constant 0 : index
      %20 = vector.load %arg9[%c0_22, %c0_23] : memref<8x128xf32, #tpu.memory_space<vmem>>, vector<8x128xf32>
      %c0_24 = arith.constant 0 : index
      %c0_25 = arith.constant 0 : index
      %21 = vector.load %arg5[%c0_24, %c0_25] : memref<1x128xf32, #tpu.memory_space<vmem>>, vector<1x128xf32>
      %22 = vector.broadcast %21 : vector<1x128xf32> to vector<8x128xf32>
      %23 = arith.addf %20, %22 : vector<8x128xf32>
      %24 = arith.addf %23, %19 : vector<8x128xf32>
      %c0_26 = arith.constant 0 : index
      %c0_27 = arith.constant 0 : index
      %25 = vector.load %arg8[%c0_26, %c0_27] : memref<8x128xf32, #tpu.memory_space<vmem>>, vector<8x128xf32>
      tpu.vector_store %arg8[%c0_26, %c0_27], %24 {strides = array<i32>} : memref<8x128xf32, #tpu.memory_space<vmem>>, vector<8x128xf32>,
    } else {
    }
    return
  }
  func.func @transform_0(%arg0: i32, %arg1: i32, %arg2: i32) -> (i32, i32) {
    %c0_i32 = arith.constant 0 : i32
    return %arg0, %arg2 : i32, i32
  }
  func.func @transform_1(%arg0: i32, %arg1: i32, %arg2: i32) -> (i32, i32) {
    %c0_i32 = arith.constant 0 : i32
    return %arg1, %arg2 : i32, i32
  }
  func.func @transform_2(%arg0: i32, %arg1: i32, %arg2: i32) -> (i32, i32) {
    %c0_i32 = arith.constant 0 : i32
    %c0_i32_0 = arith.constant 0 : i32
    return %c0_i32, %arg1 : i32, i32
  }
  func.func @transform_3(%arg0: i32, %arg1: i32, %arg2: i32) -> (i32, i32) {
    %c0_i32 = arith.constant 0 : i32
    %c0_i32_0 = arith.constant 0 : i32
    return %arg2, %c0_i32 : i32, i32
  }
  func.func @transform_4(%arg0: i32, %arg1: i32, %arg2: i32) -> (i32, i32) {
    %c0_i32 = arith.constant 0 : i32
    %c0_i32_0 = arith.constant 0 : i32
    return %c0_i32, %arg1 : i32, i32
  }
  func.func @transform_5(%arg0: i32, %arg1: i32, %arg2: i32) -> (i32, i32) {
    %c0_i32 = arith.constant 0 : i32
    return %arg0, %arg1 : i32, i32
  }
}

</mosaic_0001>

<bundles_post_ra>
// kernel: tpu_custom_call.1
= control target key start
LH: loop header
LB: loop body
LE: loop exit
PB: predicated region body
PF: predicated region fallthrough
CT: control target
= control target key end

     0   :  { %10 = vsyncpa [#allocation5], 0  ;;  %s878_s0 = inlined_call_operand.hbm [shape: f32[8,128], index: 0, kind: input, shape index: {}]   ;;  %s879_s1 = inlined_call_operand.hbm [shape: f32[128,128], index: 1, kind: input, shape index: {}]   ;;  %s880_s2 = inlined_call_operand.vmem [shape: f32[1,128], index: 2, kind: input, shape index: {}]   ;;  %s881_s3 = inlined_call_operand.hbm [shape: f32[128,128], index: 3, kind: input, shape index: {}]   ;;  %s882_s4 = inlined_call_operand.hbm [shape: f32[128,128], index: 4, kind: input, shape index: {}]   ;;  %s883_s5 = inlined_call_operand.hbm [shape: f32[8,128], index: 5, kind: output, shape index: {}]  }
   0x1   :  { %11 = vsyncpa [#allocation8], 0 }
   0x2   :  { %12 = vsyncpa [#allocation11], 0 }
   0x3   :  { %13 = vsyncpa [#allocation6], 0  ;;  %s736_s18 = smov [#allocation7]   ;;  %s618_s22 = scalar_lea.hbm %s879_s1, 2048 }
   0x4   :  { %s29_s19 = sshll.u32 %s736_s18, 4  ;;  %p619_p0 = scmp.ne.s32.totalorder %s879_s1, %s618_s22  ;;  %s30_s19 = int_to_ptr.vmem [resolvable:$true] %s29_s19 }
   0x5   :  { %p622_p1 = scmp.lt.u32.totalorder %s618_s22, %s879_s1 }
   0x7   :  { %p624_p2 = pnand %p622_p1, %p619_p0 }
   0x9   :  { %627 = shalt.err (!%p624_p2)
}
   0xa   :  { %s628_s27 = scalar_lea.vmem %s30_s19, 2048  ;;  %p633_p4 = scmp.lt.s32.totalorder %s30_s19, %s30_s19 }
   0xb   :  { %p629_p3 = scmp.ne.s32.totalorder %s30_s19, %s628_s27  ;;  %p634_p5 = scmp.lt.s32.totalorder %s628_s27, %s628_s27 }
   0xd   :  { %p635_p6 = por %p634_p5, %p633_p4 }
   0xf   :  { %p636_p7 = pnand %p635_p6, %p629_p3 }
  0x11   :  { %639 = shalt.err (!%p636_p7)
}
  0x12   :  { %s737_s28 = smov 128   ;;  %s738_s29 = smov 8  }
  0x13   :  { %35 = dma.hbm_to_vmem [thread:$0]  %s879_s1, 2048, %s30_s19, [#allocation8], %s737_s28, %s737_s28, %s738_s29  }
  0x14   :  { %s739_s7 = smov [#allocation4]   ;;  %s740_s9 = smov [#allocation9]  }
  0x15   :  { %s20_s8 = sshll.u32 %s739_s7, 4  ;;  %s43_s10 = sshll.u32 %s740_s9, 4  ;;  %s21_s8 = int_to_ptr.vmem [resolvable:$true] %s20_s8  ;;  %s44_s10 = int_to_ptr.vmem [resolvable:$true] %s43_s10 }
  0x16   :  { %s640_s13 = scalar_lea.hbm %s878_s0, 128 }
  0x17   :  { %p641_p8 = scmp.ne.s32.totalorder %s878_s0, %s640_s13  ;;  %p644_p9 = scmp.lt.u32.totalorder %s640_s13, %s878_s0 }
  0x19   :  { %p646_p10 = pnand %p644_p9, %p641_p8 }
  0x1b   :  { %649 = shalt.err (!%p646_p10)
}
  0x1c   :  { %s650_s1 = scalar_lea.vmem %s21_s8, 128  ;;  %p655_p12 = scmp.lt.s32.totalorder %s21_s8, %s21_s8 }
  0x1d   :  { %p651_p11 = scmp.ne.s32.totalorder %s21_s8, %s650_s1  ;;  %p656_p13 = scmp.lt.s32.totalorder %s650_s1, %s650_s1 }
  0x1f   :  { %p657_p0 = por %p656_p13, %p655_p12 }
  0x21   :  { %p658_p1 = pnand %p657_p0, %p651_p11 }
  0x23   :  { %661 = shalt.err (!%p658_p1)
}
  0x24   :  { %23 = dma.hbm_to_vmem [thread:$0]  %s878_s0, 128, %s21_s8, [#allocation5]  }
  0x25   :  { %s662_s22 = scalar_lea.hbm %s881_s3, 2048 }
  0x26   :  { %p663_p2 = scmp.ne.s32.totalorder %s881_s3, %s662_s22  ;;  %p666_p3 = scmp.lt.u32.totalorder %s662_s22, %s881_s3 }
  0x28   :  { %p668_p4 = pnand %p666_p3, %p663_p2 }
  0x2a   :  { %671 = shalt.err (!%p668_p4)
}
  0x2b   :  { %s672_s27 = scalar_lea.vmem %s44_s10, 2048  ;;  %p677_p6 = scmp.lt.s32.totalorder %s44_s10, %s44_s10 }
  0x2c   :  { %p673_p5 = scmp.ne.s32.totalorder %s44_s10, %s672_s27  ;;  %p678_p7 = scmp.lt.s32.totalorder %s672_s27, %s672_s27 }
  0x2e   :  { %p679_p8 = por %p678_p7, %p677_p6 }
  0x30   :  { %p680_p9 = pnand %p679_p8, %p673_p5 }
  0x32   :  { %683 = shalt.err (!%p680_p9)
}
  0x33   :  { %49 = dma.hbm_to_vmem [thread:$0]  %s881_s3, 2048, %s44_s10, [#allocation8], %s737_s28, %s737_s28, %s738_s29  }
  0x34   :  { %s741_s6 = smov [#allocation10]   ;;  %s684_s11 = scalar_lea.hbm %s882_s4, 2048 }
  0x35   :  { %s55_s7 = sshll.u32 %s741_s6, 4  ;;  %p685_p10 = scmp.ne.s32.totalorder %s882_s4, %s684_s11  ;;  %s56_s7 = int_to_ptr.vmem [resolvable:$true] %s55_s7 }
  0x36   :  { %p688_p11 = scmp.lt.u32.totalorder %s684_s11, %s882_s4 }
  0x38   :  { %p690_p12 = pnand %p688_p11, %p685_p10 }
  0x3a   :  { %693 = shalt.err (!%p690_p12)
}
  0x3b   :  { %s694_s16 = scalar_lea.vmem %s56_s7, 2048  ;;  %p699_p0 = scmp.lt.s32.totalorder %s56_s7, %s56_s7 }
  0x3c   :  { %p695_p13 = scmp.ne.s32.totalorder %s56_s7, %s694_s16  ;;  %p700_p1 = scmp.lt.s32.totalorder %s694_s16, %s694_s16 }
  0x3e   :  { %p701_p2 = por %p700_p1, %p699_p0 }
  0x40   :  { %p702_p3 = pnand %p701_p2, %p695_p13 }
  0x42   :  { %705 = shalt.err (!%p702_p3)
}
  0x43   :  { %61 = dma.hbm_to_vmem [thread:$0]  %s882_s4, 2048, %s56_s7, [#allocation11], %s737_s28, %s737_s28, %s738_s29  }
  0x44   :  { %728 = dma.done.wait [#allocation5], 128  }
  0x45   :  { %729 = vsyncadd [#allocation5], 4294967168 }
  0x46   :  { %730 = dma.done.wait [#allocation8], 4096  }
  0x47   :  { %731 = vsyncadd [#allocation8], 4294963200 }
  0x48   :  { %732 = dma.done.wait [#allocation11], 2048  }
  0x49   :  { %733 = vsyncadd [#allocation11], 4294965248  ;;  %v742_v0 = vmov 0.0|0.0   ;;  %vm743_vm0 = vmmov 0   ;;  %v744_v1 = vmov 0.0   ;;  %v171_v2 = vld [vmem:[#allocation9] sm:$0xff] }
  0x4a   :  { %558 = vmatprep.subr.bf16.mxu1 %v742_v0  ;;  %496 = vmatprep.mubr.msk.f32.mxu1 %vm743_vm0, %v744_v1  ;;  %v172_v3 = vld [vmem:[#allocation9 + $0x8] sm:$0xff]  ;;  %v173_v4 = vld [vmem:[#allocation9 + $0x10] sm:$0xff]  ;;  %v174_v6 = vld [vmem:[#allocation9 + $0x18] sm:$0xff]  ;;  %s745_s29 = smov [#allocation12]  }
  0x4b   :  { %534 = vmatprep.subr.bf16.mxu0 %v742_v0  ;;  %461 = vmatprep.mubr.msk.f32.mxu0 %vm743_vm0, %v744_v1  ;;  %v559_v5 = vpack.c.bf16 %v172_v3, %v171_v2  ;;  %v562_v7 = vpack.c.bf16 %v174_v6, %v173_v4  ;;  %v175_v8 = vld [vmem:[#allocation9 + $0x20] sm:$0xff]  ;;  %v176_v9 = vld [vmem:[#allocation9 + $0x28] sm:$0xff]  ;;  %v177_v14 = vld [vmem:[#allocation9 + $0x30] sm:$0xff]  ;;  %s366_s17 = sshll.u32 %s745_s29, 4  ;;  %s367_s17 = int_to_ptr.vmem [resolvable:$true] %s366_s17 }
  0x4c   :  { %v82_v10 = vld [vmem:[#allocation7] sm:$0xff]  ;;  %v83_v11 = vld [vmem:[#allocation7 + $0x8] sm:$0xff]  ;;  %v565_v12 = vpack.c.bf16 %v176_v9, %v175_v8  ;;  %v178_v15 = vld [vmem:[#allocation9 + $0x38] sm:$0xff]  ;;  %s706_s1 = scalar_lea.vmem %s367_s17, 128  ;;  %p711_p5 = scmp.lt.s32.totalorder %s367_s17, %s367_s17 }
  0x4d   :  { %560 = vmatpush3.bf16.msra.mxu1 %v559_v5  ;;  %v535_v13 = vpack.c.bf16 %v83_v11, %v82_v10  ;;  %v84_v16 = vld [vmem:[#allocation7 + $0x10] sm:$0xff]  ;;  %v85_v17 = vld [vmem:[#allocation7 + $0x18] sm:$0xff]  ;;  %v568_v18 = vpack.c.bf16 %v178_v15, %v177_v14  ;;  %v179_v19 = vld [vmem:[#allocation9 + $0x40] sm:$0xff]  ;;  %p707_p4 = scmp.ne.s32.totalorder %s367_s17, %s706_s1  ;;  %p712_p6 = scmp.lt.s32.totalorder %s706_s1, %s706_s1 }
  0x4e   :  { %561 = vmatprep.subr.bf16.mxu1 %v742_v0  ;;  %v180_v20 = vld [vmem:[#allocation9 + $0x48] sm:$0xff]  ;;  %v538_v21 = vpack.c.bf16 %v85_v17, %v84_v16  ;;  %v181_v23 = vld [vmem:[#allocation9 + $0x50] sm:$0xff]  ;;  %v182_v24 = vld [vmem:[#allocation9 + $0x58] sm:$0xff] }
  0x4f   :  { %536 = vmatpush3.bf16.xpose.msra.mxu0 %v535_v13  ;;  %v571_v22 = vpack.c.bf16 %v180_v20, %v179_v19  ;;  %v86_v25 = vld [vmem:[#allocation7 + $0x20] sm:$0xff]  ;;  %v87_v26 = vld [vmem:[#allocation7 + $0x28] sm:$0xff]  ;;  %v574_v27 = vpack.c.bf16 %v182_v24, %v181_v23  ;;  %v185_v32 = vld [vmem:[#allocation9 + $0x70] sm:$0xff]  ;;  %p713_p7 = por %p712_p6, %p711_p5 }
  0x50   :  { %537 = vmatprep.subr.bf16.mxu0 %v742_v0  ;;  %v183_v28 = vld [vmem:[#allocation9 + $0x60] sm:$0xff]  ;;  %v184_v29 = vld [vmem:[#allocation9 + $0x68] sm:$0xff]  ;;  %v541_v30 = vpack.c.bf16 %v87_v26, %v86_v25  ;;  %v186_v33 = vld [vmem:[#allocation9 + $0x78] sm:$0xff] }
  0x51   :  { %563 = vmatpush3.bf16.msra.mxu1 %v562_v7  ;;  %v577_v31 = vpack.c.bf16 %v184_v29, %v183_v28  ;;  %v88_v34 = vld [vmem:[#allocation7 + $0x30] sm:$0xff]  ;;  %v89_v35 = vld [vmem:[#allocation7 + $0x38] sm:$0xff]  ;;  %v580_v36 = vpack.c.bf16 %v186_v33, %v185_v32  ;;  %v263_v37 = vld [vmem:[#allocation10] sm:$0xff]  ;;  %p714_p8 = pnand %p713_p7, %p707_p4 }
  0x52   :  { %564 = vmatprep.subr.bf16.mxu1 %v742_v0  ;;  %v264_v38 = vld [vmem:[#allocation10 + $0x8] sm:$0xff]  ;;  %v544_v39 = vpack.c.bf16 %v89_v35, %v88_v34  ;;  %v80_v40 = vld [vmem:[#allocation4] sm:$0xff]  ;;  %v265_v42 = vld [vmem:[#allocation10 + $0x10] sm:$0xff] }
  0x53   :  { %v583_v41 = vpack.c.bf16 %v264_v38, %v263_v37  ;;  %v266_v43 = vld [vmem:[#allocation10 + $0x18] sm:$0xff]  ;;  %v90_v44 = vld [vmem:[#allocation7 + $0x40] sm:$0xff]  ;;  %v91_v45 = vld [vmem:[#allocation7 + $0x48] sm:$0xff] }
  0x54   :  { %v586_v46 = vpack.c.bf16 %v266_v43, %v265_v42  ;;  %v267_v47 = vld [vmem:[#allocation10 + $0x20] sm:$0xff]  ;;  %v268_v48 = vld [vmem:[#allocation10 + $0x28] sm:$0xff]  ;;  %v547_v49 = vpack.c.bf16 %v91_v45, %v90_v44  ;;  %v269_v51 = vld [vmem:[#allocation10 + $0x30] sm:$0xff] }
  0x55   :  { %566 = vmatpush3.bf16.msra.mxu1 %v565_v12  ;;  %v589_v50 = vpack.c.bf16 %v268_v48, %v267_v47  ;;  %v270_v52 = vld [vmem:[#allocation10 + $0x38] sm:$0xff]  ;;  %v92_v53 = vld [vmem:[#allocation7 + $0x50] sm:$0xff]  ;;  %v271_v56 = vld [vmem:[#allocation10 + $0x40] sm:$0xff] }
  0x56   :  { %567 = vmatprep.subr.bf16.mxu1 %v742_v0  ;;  %v93_v54 = vld [vmem:[#allocation7 + $0x58] sm:$0xff]  ;;  %v592_v55 = vpack.c.bf16 %v270_v52, %v269_v51  ;;  %v272_v57 = vld [vmem:[#allocation10 + $0x48] sm:$0xff]  ;;  %v273_v60 = vld [vmem:[#allocation10 + $0x50] sm:$0xff] }
  0x57   :  { %539 = vmatpush3.bf16.xpose.msra.mxu0 %v538_v21  ;;  %v550_v58 = vpack.c.bf16 %v93_v54, %v92_v53  ;;  %v595_v59 = vpack.c.bf16 %v272_v57, %v271_v56  ;;  %v274_v61 = vld [vmem:[#allocation10 + $0x58] sm:$0xff]  ;;  %v94_v62 = vld [vmem:[#allocation7 + $0x60] sm:$0xff]  ;;  %v95_v63 = vld [vmem:[#allocation7 + $0x68] sm:$0xff] }
  0x58   :  { %540 = vmatprep.subr.bf16.mxu0 %v742_v0  ;;  %v275_v2 = vld [vmem:[#allocation10 + $0x60] sm:$0xff]  ;;  %v276_v3 = vld [vmem:[#allocation10 + $0x68] sm:$0xff]  ;;  %v553_v4 = vpack.c.bf16 %v95_v63, %v94_v62  ;;  %v277_v6 = vld [vmem:[#allocation10 + $0x70] sm:$0xff] }
  0x59   :  { %569 = vmatpush3.bf16.msra.mxu1 %v568_v18  ;;  %v601_v5 = vpack.c.bf16 %v276_v3, %v275_v2  ;;  %v278_v7 = vld [vmem:[#allocation10 + $0x78] sm:$0xff]  ;;  %v96_v8 = vld [vmem:[#allocation7 + $0x70] sm:$0xff] }
  0x5a   :  { %570 = vmatprep.subr.bf16.mxu1 %v742_v0  ;;  %v97_v9 = vld [vmem:[#allocation7 + $0x78] sm:$0xff]  ;;  %v604_v10 = vpack.c.bf16 %v278_v7, %v277_v6 }
  0x5b   :  { %v556_v11 = vpack.c.bf16 %v97_v9, %v96_v8  ;;  %v377_v17 = vld [vmem:[%s880_s2] ss:$0 sm:$0xff] }
  0x5d   :  { %572 = vmatpush3.bf16.msra.mxu1 %v571_v22 }
  0x5e   :  { %573 = vmatprep.subr.bf16.mxu1 %v742_v0 }
  0x5f   :  { %542 = vmatpush3.bf16.xpose.msra.mxu0 %v541_v30 }
  0x60   :  { %543 = vmatprep.subr.bf16.mxu0 %v742_v0 }
  0x61   :  { %575 = vmatpush3.bf16.msra.mxu1 %v574_v27 }
  0x62   :  { %576 = vmatprep.subr.bf16.mxu1 %v742_v0 }
  0x65   :  { %578 = vmatpush3.bf16.msra.mxu1 %v577_v31 }
  0x66   :  { %579 = vmatprep.subr.bf16.mxu1 %v742_v0 }
  0x67   :  { %545 = vmatpush3.bf16.xpose.msra.mxu0 %v544_v39 }
  0x68   :  { %546 = vmatprep.subr.bf16.mxu0 %v742_v0 }
  0x69   :  { %581 = vmatpush3.bf16.msra.mxu1 %v580_v36 }
  0x6a   :  { %582 = vmatprep.subr.bf16.mxu1 %v742_v0 }
  0x6c   :  { %497 = vmatmul.mubr.f32.vlgmr.msra.gmra.mrb[0].mxu1 %v80_v40 }
  0x6d   :  { %584 = vmatpush3.bf16.msra.mxu1 %v583_v41  ;;  %531 = vmatprep.mubr.msk.f32.mxu1 %vm743_vm0, %v744_v1  ;;  %v598_v1 = vpack.c.bf16 %v274_v61, %v273_v60 }
  0x6e   :  { %585 = vmatprep.subr.bf16.mxu1 %v742_v0 }
  0x6f   :  { %548 = vmatpush3.bf16.xpose.msra.mxu0 %v547_v49 }
  0x70   :  { %549 = vmatprep.subr.bf16.mxu0 %v742_v0 }
  0x71   :  { %587 = vmatpush3.bf16.msra.mxu1 %v586_v46 }
  0x72   :  { %588 = vmatprep.subr.bf16.mxu1 %v742_v0 }
  0x75   :  { %590 = vmatpush3.bf16.msra.mxu1 %v589_v50 }
  0x76   :  { %591 = vmatprep.subr.bf16.mxu1 %v742_v0 }
  0x77   :  { %551 = vmatpush3.bf16.xpose.msra.mxu0 %v550_v58 }
  0x78   :  { %552 = vmatprep.subr.bf16.mxu0 %v742_v0 }
  0x79   :  { %593 = vmatpush3.bf16.msra.mxu1 %v592_v55 }
  0x7a   :  { %594 = vmatprep.subr.bf16.mxu1 %v742_v0 }
  0x7d   :  { %596 = vmatpush3.bf16.msra.mxu1 %v595_v59 }
  0x7e   :  { %597 = vmatprep.subr.bf16.mxu1 %v742_v0 }
  0x7f   :  { %554 = vmatpush3.bf16.xpose.msra.mxu0 %v553_v4 }
  0x80   :  { %555 = vmatprep.subr.bf16.mxu0 %v742_v0 }
  0x81   :  { %599 = vmatpush3.bf16.msra.mxu1 %v598_v1 }
  0x82   :  { %600 = vmatprep.subr.bf16.mxu1 %v742_v0 }
  0x85   :  { %602 = vmatpush3.bf16.msra.mxu1 %v601_v5 }
  0x86   :  { %603 = vmatprep.subr.bf16.mxu1 %v742_v0 }
  0x87   :  { %557 = vmatpush3.bf16.xpose.msra.mxu0 %v556_v11 }
  0x89   :  { %605 = vmatpush3.bf16.msra.mxu1 %v604_v10 }
  0x8e   :  { %462 = vmatmul.mubr.f32.vlgmr.msra.gmra.mrb[0].mxu0 %v80_v40 }
 0x13f   :  { %v253_v12 = vpop.f32.mrb[0].mxu1 }
 0x140   :  { %v498_v13 = vpop.f32.mrb[1].mxu1  ;;  %532 = vmatmul.mubr.f32.vlgmr.msra.gmra.mrb[2].mxu1 %v253_v12 }
 0x161   :  { %v164_v14 = vpop.f32.mrb[0].mxu0 }
 0x162   :  { %v463_v15 = vpop.f32.mrb[1].mxu0 }
 0x213   :  { %v345_v16 = vpop.f32.mrb[2].mxu1 }
 0x214   :  { %v606_v18 = vadd.f32 %v345_v16, %v164_v14  ;;  %v533_v19 = vpop.f32.mrb[3].mxu1 }
 0x216   :  { %v607_v20 = vadd.f32 %v606_v18, %v377_v17 }
 0x218   :  { %359 = vst [vmem:[#allocation12] sm:$0xff] %v607_v20 }
 0x219   :  { %717 = shalt.err (!%p714_p8)
}
 0x21a   :  { %s718_s20 = scalar_lea.hbm %s883_s5, 128 }
 0x21b   :  { %p719_p9 = scmp.ne.s32.totalorder %s883_s5, %s718_s20  ;;  %p722_p10 = scmp.lt.u32.totalorder %s718_s20, %s883_s5 }
 0x21d   :  { %p724_p11 = pnand %p722_p10, %p719_p9 }
 0x21f   :  { %727 = shalt.err (!%p724_p11)
}
 0x220   :  { %369 = dma.vmem_to_hbm [thread:$0]  %s367_s17, 128, %s883_s5, [#allocation6]  }
 0x221   :  { %734 = dma.done.wait [#allocation6], 128  }
 0x222   :  { %735 = vsyncadd [#allocation6], 4294967168 }
 0x223   :  { %373 = vsyncpa [#allocation5], 1 }
 0x224   :  { %374 = vsyncpa [#allocation8], 1 }
 0x225   :  { %375 = vsyncpa [#allocation11], 1 }
 0x226   :  { %376 = vsyncpa [#allocation6], 1 }

</bundles_post_ra>
